<compile_context>
chip_gen: v7x
topology: tpu7x:2x2x1
jax: 0.10.0
libtpu: 0.0.40
codegen_flags: <defaults>
</compile_context>

<pallas_src>
import functools

import jax
import jax.numpy as jnp
import numpy as np
from jax.experimental import pallas as pl
from jax.experimental.pallas import tpu as pltpu


# -----------------------------------------------------------------------------
# Host-side construction of the IDWT reconstruction matrices (mirrors
# IDWT_1D.get_matrix, without requiring pywt).
# -----------------------------------------------------------------------------
_WAVELET_DEC_FILTERS = {
    # pywt.Wavelet(name).dec_lo, pywt.Wavelet(name).dec_hi
    "haar": (
        [0.7071067811865476, 0.7071067811865476],
        [-0.7071067811865476, 0.7071067811865476],
    ),
    "db2": (
        [-0.12940952255092145, 0.22414386804185735,
         0.836516303737469, 0.48296291314469025],
        [-0.48296291314469025, 0.836516303737469,
         -0.22414386804185735, -0.12940952255092145],
    ),
}


def idwt_matrices(wavename, input_height):
    """Build (matrix_low, matrix_high) exactly as IDWT_1D.get_matrix does."""
    dec_lo, dec_hi = _WAVELET_DEC_FILTERS[wavename]
    band_low = list(reversed(dec_lo))
    band_high = list(reversed(dec_hi))
    assert len(band_low) == len(band_high)
    band_length = len(band_low)
    assert band_length % 2 == 0
    band_length_half = band_length // 2

    L1 = input_height
    assert L1 >= 2
    L = L1 // 2
    matrix_h = np.zeros((L, L1 + band_length - 2), dtype=np.float64)
    matrix_g = np.zeros((L1 - L, L1 + band_length - 2), dtype=np.float64)
    end = None if band_length_half == 1 else (-band_length_half + 1)

    index = 0
    for i in range(L):
        for j in range(band_length):
            matrix_h[i, index + j] = band_low[j]
        index += 2
    index = 0
    for i in range(L1 - L):
        for j in range(band_length):
            matrix_g[i, index + j] = band_high[j]
        index += 2

    matrix_h = matrix_h[:, band_length_half - 1:end]
    matrix_g = matrix_g[:, band_length_half - 1:end]
    return (jnp.asarray(matrix_h, jnp.float32),
            jnp.asarray(matrix_g, jnp.float32))


def _round_up(x, m):
    return (x + m - 1) // m * m


# -----------------------------------------------------------------------------
# Kernels
# -----------------------------------------------------------------------------
def _idwt_dense_kernel(l_ref, h_ref, ml_ref, mh_ref, o_ref):
    """Full-K contraction: one (tm, Ll)x(Ll, tn) + (tm, Lh)x(Lh, tn) per tile."""
    acc = jnp.dot(l_ref[...], ml_ref[...], preferred_element_type=jnp.float32)
    acc = acc + jnp.dot(h_ref[...], mh_ref[...],
                        preferred_element_type=jnp.float32)
    o_ref[...] = acc.astype(o_ref.dtype)


def _idwt_banded_kernel(l_ref, h_ref, ml_ref, mh_ref, o_ref, acc_ref, *,
                        koff, nkb):
    """Banded K contraction: accumulate only the K blocks touching this
    column tile's band (k = j - koff + s); edge steps are masked out."""
    j = pl.program_id(1)
    s = pl.program_id(2)

    @pl.when(s == 0)
    def _():
        acc_ref[...] = jnp.zeros_like(acc_ref)

    kblk = j - koff + s

    @pl.when((kblk >= 0) & (kblk < nkb))
    def _():
        acc_ref[...] += jnp.dot(l_ref[...], ml_ref[...],
                                preferred_element_type=jnp.float32)
        acc_ref[...] += jnp.dot(h_ref[...], mh_ref[...],
                                preferred_element_type=jnp.float32)

    @pl.when(s == pl.num_programs(2) - 1)
    def _():
        o_ref[...] = acc_ref[...].astype(o_ref.dtype)


# -----------------------------------------------------------------------------
# Wrapper
# -----------------------------------------------------------------------------
@functools.partial(jax.jit, static_argnames=("compute_dtype", "band_length"))
def idwt_1d(lfc, hfc, matrix_low, matrix_high, compute_dtype=None,
            band_length=None):
    """lfc: (N, C, Ll), hfc: (N, C, Lh)  ->  reconstructed (N, C, Ll + Lh)."""
    N, C, Ll = lfc.shape
    Lh = hfc.shape[-1]
    L1 = Ll + Lh
    NC = N * C
    out_dtype = lfc.dtype

    x_l = lfc.reshape(NC, Ll)
    x_h = hfc.reshape(NC, Lh)
    if compute_dtype is not None:
        x_l = x_l.astype(compute_dtype)
        x_h = x_h.astype(compute_dtype)
        matrix_low = matrix_low.astype(compute_dtype)
        matrix_high = matrix_high.astype(compute_dtype)
    itemsize = x_l.dtype.itemsize

    # Tiny / awkward shapes: a single XLA matmul beats a one-step Pallas kernel
    # with masked (<128-lane) stores and per-step overhead.
    if L1 < 128 or (L1 % 128 != 0 and L1 * L1 * itemsize > (16 << 20)):
        out = jnp.matmul(x_l, matrix_low) + jnp.matmul(x_h, matrix_high)
        return out.astype(out_dtype).reshape(N, C, L1)

    # ---- column (lane) tile + regime selection ------------------------------
    banded = False
    tn = L1
    if L1 % 512 == 0 and L1 >= 1024 and Ll == Lh:
        banded, tn = True, 512
    elif L1 % 256 == 0 and L1 >= 512 and L1 % 512 != 0 and Ll == Lh:
        banded, tn = True, 256
    elif L1 % 128 == 0 and L1 > 512:
        for cand in (512, 384, 256, 128):
            if L1 % cand == 0:
                tn = cand
                break
    ncol = L1 // tn

    # ---- row (sublane) tile --------------------------------------------------
    tm = min(256, _round_up(NC, 8))
    if not banded:
        # keep resident footprint comfortably inside v7x's 64 MiB VMEM
        while tm > 8 and 2 * (tm * L1 + L1 * tn + tm * tn) * itemsize > (40 << 20):
            tm = max(8, tm // 2)
    nrow = pl.cdiv(NC, tm)
    # Give both v7x TensorCores work when the grid would otherwise collapse.
    if nrow == 1 and ncol == 1 and NC >= 16:
        tm = _round_up((NC + 1) // 2, 8)
        nrow = pl.cdiv(NC, tm)

    # ---- specs ---------------------------------------------------------------
    if banded:
        tk = tn // 2
        nkb = Ll // tk                       # number of matrix-row (K) blocks
        haar_like = band_length is not None and band_length // 2 == 1
        koff = 0 if haar_like else 1
        n_k = 1 if haar_like else 3
        if band_length is not None:
            assert band_length // 2 <= tk    # band spill stays in +/- 1 block

        def x_map(i, j, s):
            return (i, jnp.clip(j - koff + s, 0, nkb - 1))

        def m_map(i, j, s):
            return (jnp.clip(j - koff + s, 0, nkb - 1), j)

        grid = (nrow, ncol, n_k)
        in_specs = [
            pl.BlockSpec((tm, tk), x_map),          # lfc rows, K block
            pl.BlockSpec((tm, tk), x_map),          # hfc rows, K block
            pl.BlockSpec((tk, tn), m_map),          # matrix_low band block
            pl.BlockSpec((tk, tn), m_map),          # matrix_high band block
        ]
        out_specs = pl.BlockSpec((tm, tn), lambda i, j, s: (i, j))
        scratch = [pltpu.VMEM((tm, tn), jnp.float32)]
        kernel = functools.partial(_idwt_banded_kernel, koff=koff, nkb=nkb)
        semantics = ("parallel", "parallel", "arbitrary")
        tile_bytes = (2 * (2 * tm * tk * itemsize + 2 * tk * tn * itemsize
                           + tm * tn * out_dtype.itemsize)
                      + tm * tn * 4)
    else:
        grid = (nrow, ncol)
        in_specs = [
            pl.BlockSpec((tm, Ll), lambda i, j: (i, 0)),
            pl.BlockSpec((tm, Lh), lambda i, j: (i, 0)),
            pl.BlockSpec((Ll, tn), lambda i, j: (0, j)),
            pl.BlockSpec((Lh, tn), lambda i, j: (0, j)),
        ]
        out_specs = pl.BlockSpec((tm, tn), lambda i, j: (i, j))
        scratch = []
        kernel = _idwt_dense_kernel
        semantics = ("parallel", "parallel")
        tile_bytes = 2 * (tm * (Ll + Lh) * itemsize
                          + (Ll + Lh) * tn * itemsize
                          + tm * tn * out_dtype.itemsize)

    vmem_limit = int(min(64 << 20, max(32 << 20, int(tile_bytes * 1.5))))

    out = pl.pallas_call(
        kernel,
        out_shape=jax.ShapeDtypeStruct((NC, L1), out_dtype),
        grid_spec=pltpu.PrefetchScalarGridSpec(
            num_scalar_prefetch=0,
            grid=grid,
            in_specs=in_specs,
            out_specs=out_specs,
            scratch_shapes=scratch),
        compiler_params=pltpu.CompilerParams(
            dimension_semantics=semantics,
            vmem_limit_bytes=vmem_limit),
    )(x_l, x_h, matrix_low, matrix_high)

    return out.reshape(N, C, L1)


def idwt_1d_reference(lfc, hfc, matrix_low, matrix_high):
    """Pure-JAX reference matching IDWTFunction_1D.forward."""
    return jnp.matmul(lfc, matrix_low) + jnp.matmul(hfc, matrix_high)


# -----------------------------------------------------------------------------
# Demo / correctness checks
# -----------------------------------------------------------------------------
if __name__ == "__main__":
    key = jax.random.PRNGKey(0)

    def run_case(idx, wavename, N, C, half, compute_dtype=None,
                 rtol=1e-5, atol=1e-5):
        kl, kh = jax.random.split(jax.random.fold_in(key, idx))
        lfc = jax.random.normal(kl, (N, C, half), jnp.float32)
        hfc = jax.random.normal(kh, (N, C, half), jnp.float32)
        ml, mh = idwt_matrices(wavename, 2 * half)
        band_length = len(_WAVELET_DEC_FILTERS[wavename][0])
        out = idwt_1d(lfc, hfc, ml, mh, compute_dtype=compute_dtype,
                      band_length=band_length)
        out = jax.block_until_ready(out)
        ref = idwt_1d_reference(lfc, hfc, ml, mh)
        assert out.shape == (N, C, 2 * half)
        np.testing.assert_allclose(np.asarray(out), np.asarray(ref),
                                   rtol=rtol, atol=atol)

    # Small lane-dense case (Pallas dense regime, single fused tile).
    run_case(0, "haar", 2, 4, 64)
    # Banded K-tiled regime, haar (exact block-diagonal band, 1 K step).
    run_case(1, "haar", 1, 8, 512)
    # Banded K-tiled regime, db2 (3 K steps with edge masking).
    run_case(2, "db2", 1, 8, 512, rtol=1e-4, atol=1e-4)
    # bf16 inputs / f32 MXU accumulation (halves HBM traffic).
    run_case(3, "haar", 2, 4, 64, compute_dtype=jnp.bfloat16,
             rtol=3e-2, atol=3e-2)
    # Tiny L1 exercises the XLA fallback (Pallas not worth it below 128 lanes).
    run_case(4, "db2", 2, 4, 8)

    print("KERNEL_OK")
</pallas_src>

<mosaic_0001>
module attributes {stable_mosaic.version = 11 : i64} {
  func.func @_idwt_dense_kernel(%arg0: i32, %arg1: i32, %arg2: memref<8x64xf32, #tpu.memory_space<vmem>>, %arg3: memref<8x64xf32, #tpu.memory_space<vmem>>, %arg4: memref<64x128xf32, #tpu.memory_space<vmem>>, %arg5: memref<64x128xf32, #tpu.memory_space<vmem>>, %arg6: memref<8x128xf32, #tpu.memory_space<vmem>>) attributes {dimension_semantics = [#tpu.dimension_semantics<parallel>, #tpu.dimension_semantics<parallel>], iteration_bounds = array<i64: 1, 1>, scalar_prefetch = 0 : i64, scratch_operands = 0 : i64, tpu.core_type = #tpu.core_type<tc>, window_params = [{transform_indices = @transform_0, window_bounds = array<i64: 8, 64>}, {transform_indices = @transform_1, window_bounds = array<i64: 8, 64>}, {transform_indices = @transform_2, window_bounds = array<i64: 64, 128>}, {transform_indices = @transform_3, window_bounds = array<i64: 64, 128>}, {transform_indices = @transform_4, window_bounds = array<i64: 8, 128>}]} {
    %c0 = arith.constant 0 : index
    %c0_0 = arith.constant 0 : index
    %0 = vector.load %arg2[%c0, %c0_0] : memref<8x64xf32, #tpu.memory_space<vmem>>, vector<8x64xf32>
    %c0_1 = arith.constant 0 : index
    %c0_2 = arith.constant 0 : index
    %1 = vector.load %arg4[%c0_1, %c0_2] : memref<64x128xf32, #tpu.memory_space<vmem>>, vector<64x128xf32>
    %cst = arith.constant dense<0.000000e+00> : vector<8x128xf32>
    %2 = tpu.matmul %0, %1, %cst {dimension_numbers = #tpu.dot_dimension_numbers<[1], [0], [0], [1], [0, 0, 1, 1], [], []>} : vector<8x64xf32>, vector<64x128xf32>, vector<8x128xf32> -> vector<8x128xf32>
    %c0_3 = arith.constant 0 : index
    %c0_4 = arith.constant 0 : index
    %3 = vector.load %arg3[%c0_3, %c0_4] : memref<8x64xf32, #tpu.memory_space<vmem>>, vector<8x64xf32>
    %c0_5 = arith.constant 0 : index
    %c0_6 = arith.constant 0 : index
    %4 = vector.load %arg5[%c0_5, %c0_6] : memref<64x128xf32, #tpu.memory_space<vmem>>, vector<64x128xf32>
    %cst_7 = arith.constant dense<0.000000e+00> : vector<8x128xf32>
    %5 = tpu.matmul %3, %4, %cst_7 {dimension_numbers = #tpu.dot_dimension_numbers<[1], [0], [0], [1], [0, 0, 1, 1], [], []>} : vector<8x64xf32>, vector<64x128xf32>, vector<8x128xf32> -> vector<8x128xf32>
    %6 = arith.addf %2, %5 : vector<8x128xf32>
    %c0_8 = arith.constant 0 : index
    %c0_9 = arith.constant 0 : index
    %7 = vector.load %arg6[%c0_8, %c0_9] : memref<8x128xf32, #tpu.memory_space<vmem>>, vector<8x128xf32>
    tpu.vector_store %arg6[%c0_8, %c0_9], %6 {strides = array<i32>} : memref<8x128xf32, #tpu.memory_space<vmem>>, vector<8x128xf32>,
    return
  }
  func.func @transform_0(%arg0: i32, %arg1: i32) -> (i32, i32) {
    %c0_i32 = arith.constant 0 : i32
    %c0_i32_0 = arith.constant 0 : i32
    return %arg0, %c0_i32 : i32, i32
  }
  func.func @transform_1(%arg0: i32, %arg1: i32) -> (i32, i32) {
    %c0_i32 = arith.constant 0 : i32
    %c0_i32_0 = arith.constant 0 : i32
    return %arg0, %c0_i32 : i32, i32
  }
  func.func @transform_2(%arg0: i32, %arg1: i32) -> (i32, i32) {
    %c0_i32 = arith.constant 0 : i32
    %c0_i32_0 = arith.constant 0 : i32
    return %c0_i32, %arg1 : i32, i32
  }
  func.func @transform_3(%arg0: i32, %arg1: i32) -> (i32, i32) {
    %c0_i32 = arith.constant 0 : i32
    %c0_i32_0 = arith.constant 0 : i32
    return %c0_i32, %arg1 : i32, i32
  }
  func.func @transform_4(%arg0: i32, %arg1: i32) -> (i32, i32) {
    %c0_i32 = arith.constant 0 : i32
    return %arg0, %arg1 : i32, i32
  }
}

</mosaic_0001>

<bundles_post_ra>
// kernel: idwt_1d.1
= control target key start
LH: loop header
LB: loop body
LE: loop exit
PB: predicated region body
PF: predicated region fallthrough
CT: control target
= control target key end

     0   :  { %9 = vsyncpa [#allocation3], 0  ;;  %s516_s0 = inlined_call_operand.hbm [shape: f32[8,64], index: 0, kind: input, shape index: {}]   ;;  %s517_s1 = inlined_call_operand.vmem [shape: f32[8,64], index: 1, kind: input, shape index: {}]   ;;  %s518_s2 = inlined_call_operand.hbm [shape: f32[64,128], index: 2, kind: input, shape index: {}]   ;;  %s519_s3 = inlined_call_operand.hbm [shape: f32[64,128], index: 3, kind: input, shape index: {}]   ;;  %s520_s4 = inlined_call_operand.hbm [shape: f32[8,128], index: 4, kind: output, shape index: {}]  }
   0x1   :  { %10 = vsyncpa [#allocation6], 0 }
   0x2   :  { %11 = vsyncpa [#allocation4], 0  ;;  %s425_s15 = smov [#allocation5]   ;;  %s331_s19 = scalar_lea.hbm %s518_s2, 1024 }
   0x3   :  { %s29_s16 = sshll.u32 %s425_s15, 4  ;;  %p332_p0 = scmp.ne.s32.totalorder %s518_s2, %s331_s19  ;;  %s30_s16 = int_to_ptr.vmem [resolvable:$true] %s29_s16 }
   0x4   :  { %p335_p1 = scmp.lt.u32.totalorder %s331_s19, %s518_s2 }
   0x6   :  { %p337_p2 = pnand %p335_p1, %p332_p0 }
   0x8   :  { %340 = shalt.err (!%p337_p2)
}
   0x9   :  { %s341_s24 = scalar_lea.vmem %s30_s16, 1024  ;;  %p346_p4 = scmp.lt.s32.totalorder %s30_s16, %s30_s16 }
   0xa   :  { %p342_p3 = scmp.ne.s32.totalorder %s30_s16, %s341_s24  ;;  %p347_p5 = scmp.lt.s32.totalorder %s341_s24, %s341_s24 }
   0xc   :  { %p348_p6 = por %p347_p5, %p346_p4 }
   0xe   :  { %p349_p7 = pnand %p348_p6, %p342_p3 }
  0x10   :  { %352 = shalt.err (!%p349_p7)
}
  0x11   :  { %s426_s25 = smov 128   ;;  %s427_s26 = smov 8  }
  0x12   :  { %35 = dma.hbm_to_vmem [thread:$0]  %s518_s2, 1024, %s30_s16, [#allocation6], %s426_s25, %s426_s25, %s427_s26  }
  0x13   :  { %s428_s29 = smov [#allocation2]   ;;  %s429_s5 = smov [#allocation7]  }
  0x14   :  { %s18_s30 = sshll.u32 %s428_s29, 4  ;;  %s41_s6 = sshll.u32 %s429_s5, 4  ;;  %s19_s30 = int_to_ptr.vmem [resolvable:$true] %s18_s30  ;;  %s42_s6 = int_to_ptr.vmem [resolvable:$true] %s41_s6 }
  0x15   :  { %s353_s9 = scalar_lea.hbm %s516_s0, 128 }
  0x16   :  { %p354_p8 = scmp.ne.s32.totalorder %s516_s0, %s353_s9  ;;  %p357_p9 = scmp.lt.u32.totalorder %s353_s9, %s516_s0 }
  0x18   :  { %p359_p10 = pnand %p357_p9, %p354_p8 }
  0x1a   :  { %362 = shalt.err (!%p359_p10)
}
  0x1b   :  { %s363_s2 = scalar_lea.vmem %s19_s30, 128  ;;  %p368_p12 = scmp.lt.s32.totalorder %s19_s30, %s19_s30 }
  0x1c   :  { %p364_p11 = scmp.ne.s32.totalorder %s19_s30, %s363_s2  ;;  %p369_p13 = scmp.lt.s32.totalorder %s363_s2, %s363_s2 }
  0x1e   :  { %p370_p0 = por %p369_p13, %p368_p12 }
  0x20   :  { %p371_p1 = pnand %p370_p0, %p364_p11 }
  0x22   :  { %374 = shalt.err (!%p371_p1)
}
  0x23   :  { %21 = dma.hbm_to_vmem [thread:$0]  %s516_s0, 128, %s19_s30, [#allocation3]  }
  0x24   :  { %s375_s18 = scalar_lea.hbm %s519_s3, 1024 }
  0x25   :  { %p376_p2 = scmp.ne.s32.totalorder %s519_s3, %s375_s18  ;;  %p379_p3 = scmp.lt.u32.totalorder %s375_s18, %s519_s3 }
  0x27   :  { %p381_p4 = pnand %p379_p3, %p376_p2 }
  0x29   :  { %384 = shalt.err (!%p381_p4)
}
  0x2a   :  { %s385_s23 = scalar_lea.vmem %s42_s6, 1024  ;;  %p390_p6 = scmp.lt.s32.totalorder %s42_s6, %s42_s6 }
  0x2b   :  { %p386_p5 = scmp.ne.s32.totalorder %s42_s6, %s385_s23  ;;  %p391_p7 = scmp.lt.s32.totalorder %s385_s23, %s385_s23 }
  0x2d   :  { %p392_p8 = por %p391_p7, %p390_p6 }
  0x2f   :  { %p393_p9 = pnand %p392_p8, %p386_p5 }
  0x31   :  { %396 = shalt.err (!%p393_p9)
}
  0x32   :  { %47 = dma.hbm_to_vmem [thread:$0]  %s519_s3, 1024, %s42_s6, [#allocation6], %s426_s25, %s426_s25, %s427_s26  }
  0x33   :  { %419 = dma.done.wait [#allocation3], 128  }
  0x34   :  { %420 = vsyncadd [#allocation3], 4294967168 }
  0x35   :  { %421 = dma.done.wait [#allocation6], 2048  }
  0x36   :  { %422 = vsyncadd [#allocation6], 4294965248  ;;  %v430_v0 = vmov 0.0|0.0   ;;  %vm431_vm0 = vmmov 0   ;;  %v432_v1 = vmov 0.0   ;;  %v67_v2 = vld [vmem:[#allocation7] sm:$0xff] }
  0x37   :  { %297 = vmatprep.subr.bf16.mxu1 %v430_v0  ;;  %309 = vmatprep.subr.bf16.mxu0 %v430_v0  ;;  %v68_v3 = vld [vmem:[#allocation7 + $0x8] sm:$0xff]  ;;  %v58_v4 = vld [vmem:[#allocation5] sm:$0xff]  ;;  %v69_v7 = vld [vmem:[#allocation7 + $0x10] sm:$0xff]  ;;  %vm75_vm1 = vcmask 523264   ;;  %s433_s26 = smov [#allocation8]  }
  0x38   :  { %275 = vmatprep.mubr.msk.f32.mxu1 %vm431_vm0, %v432_v1  ;;  %294 = vmatprep.mubr.msk.f32.mxu0 %vm431_vm0, %v432_v1  ;;  %v298_v5 = vpack.c.bf16 %v68_v3, %v67_v2  ;;  %v59_v6 = vld [vmem:[#allocation5 + $0x8] sm:$0xff]  ;;  %v70_v8 = vld [vmem:[#allocation7 + $0x18] sm:$0xff]  ;;  %v60_v10 = vld [vmem:[#allocation5 + $0x10] sm:$0xff]  ;;  %s229_s27 = sshll.u32 %s433_s26, 4  ;;  %s230_s27 = int_to_ptr.vmem [resolvable:$true] %s229_s27 }
  0x39   :  { %v310_v9 = vpack.c.bf16 %v59_v6, %v58_v4  ;;  %v61_v11 = vld [vmem:[#allocation5 + $0x18] sm:$0xff]  ;;  %v301_v12 = vpack.c.bf16 %v70_v8, %v69_v7  ;;  %v71_v14 = vld [vmem:[#allocation7 + $0x20] sm:$0xff]  ;;  %v72_v15 = vld [vmem:[#allocation7 + $0x28] sm:$0xff]  ;;  %s397_s28 = scalar_lea.vmem %s230_s27, 128  ;;  %p402_p11 = scmp.lt.s32.totalorder %s230_s27, %s230_s27 }
  0x3a   :  { %299 = vmatpush3.bf16.msra.mxu1 %v298_v5  ;;  %v313_v13 = vpack.c.bf16 %v61_v11, %v60_v10  ;;  %v62_v16 = vld [vmem:[#allocation5 + $0x20] sm:$0xff]  ;;  %v63_v17 = vld [vmem:[#allocation5 + $0x28] sm:$0xff]  ;;  %v304_v18 = vpack.c.bf16 %v72_v15, %v71_v14  ;;  %v73_v20 = vld [vmem:[#allocation7 + $0x30] sm:$0xff]  ;;  %p398_p10 = scmp.ne.s32.totalorder %s230_s27, %s397_s28  ;;  %p403_p12 = scmp.lt.s32.totalorder %s397_s28, %s397_s28 }
  0x3b   :  { %311 = vmatpush3.bf16.msra.mxu0 %v310_v9  ;;  %300 = vmatprep.subr.bf16.mxu1 %v430_v0  ;;  %v316_v19 = vpack.c.bf16 %v63_v17, %v62_v16  ;;  %v74_v21 = vld [vmem:[#allocation7 + $0x38] sm:$0xff]  ;;  %v64_v22 = vld [vmem:[#allocation5 + $0x30] sm:$0xff] }
  0x3c   :  { %312 = vmatprep.subr.bf16.mxu0 %v430_v0  ;;  %v65_v23 = vld [vmem:[#allocation5 + $0x38] sm:$0xff]  ;;  %v307_v24 = vpack.c.bf16 %v74_v21, %v73_v20  ;;  %p404_p13 = por %p403_p12, %p402_p11 }
  0x3d   :  { %v319_v25 = vpack.c.bf16 %v65_v23, %v64_v22  ;;  %v66_v26 = vld [vmem:[%s517_s1] sm:$0xff] }
  0x3e   :  { %302 = vmatpush3.bf16.msra.mxu1 %v301_v12  ;;  %v57_v27 = vld [vmem:[#allocation2] sm:$0xff]  ;;  %p405_p0 = pnand %p404_p13, %p398_p10 }
  0x3f   :  { %314 = vmatpush3.bf16.msra.mxu0 %v313_v13  ;;  %303 = vmatprep.subr.bf16.mxu1 %v430_v0 }
  0x40   :  { %315 = vmatprep.subr.bf16.mxu0 %v430_v0 }
  0x42   :  { %305 = vmatpush3.bf16.msra.mxu1 %v304_v18 }
  0x43   :  { %317 = vmatpush3.bf16.msra.mxu0 %v316_v19  ;;  %306 = vmatprep.subr.bf16.mxu1 %v430_v0 }
  0x44   :  { %318 = vmatprep.subr.bf16.mxu0 %v430_v0 }
  0x46   :  { %308 = vmatpush3.bf16.msra.mxu1 %v307_v24 }
  0x47   :  { %320 = vmatpush3.bf16.msra.mxu0 %v319_v25 }
  0x49   :  { %276 = vmatmul.mubr.msk.f32.vlgmr.msra.gmra.mrb[0].mxu1 %vm75_vm1, %v66_v26 }
  0x4a   :  { %295 = vmatmul.mubr.msk.f32.vlgmr.msra.gmra.mrb[0].mxu0 %vm75_vm1, %v57_v27 }
 0x11c   :  { %v145_v28 = vpop.f32.mrb[0].mxu1 }
 0x11d   :  { %v218_v29 = vpop.f32.mrb[0].mxu0  ;;  %v277_v30 = vpop.f32.mrb[1].mxu1 }
 0x11e   :  { %v219_v31 = vadd.f32 %v218_v29, %v145_v28  ;;  %v296_v32 = vpop.f32.mrb[1].mxu0 }
 0x120   :  { %222 = vst [vmem:[#allocation8] sm:$0xff] %v219_v31 }
 0x121   :  { %408 = shalt.err (!%p405_p0)
}
 0x122   :  { %s409_s30 = scalar_lea.hbm %s520_s4, 128 }
 0x123   :  { %p410_p1 = scmp.ne.s32.totalorder %s520_s4, %s409_s30  ;;  %p413_p2 = scmp.lt.u32.totalorder %s409_s30, %s520_s4 }
 0x125   :  { %p415_p3 = pnand %p413_p2, %p410_p1 }
 0x127   :  { %418 = shalt.err (!%p415_p3)
}
 0x128   :  { %232 = dma.vmem_to_hbm [thread:$0]  %s230_s27, 128, %s520_s4, [#allocation4]  }
 0x129   :  { %423 = dma.done.wait [#allocation4], 128  }
 0x12a   :  { %424 = vsyncadd [#allocation4], 4294967168 }
 0x12b   :  { %236 = vsyncpa [#allocation3], 1 }
 0x12c   :  { %237 = vsyncpa [#allocation6], 1 }
 0x12d   :  { %238 = vsyncpa [#allocation4], 1 }

</bundles_post_ra>
